<compile_context>
chip_gen: v6e
topology: v6e:2x2x1
jax: 0.10.0
libtpu: 0.0.40
codegen_flags: <defaults>
</compile_context>

<pallas_src>
import functools

import jax
import jax.numpy as jnp
from jax import lax
from jax.experimental import pallas as pl
from jax.experimental.pallas import tpu as pltpu

EPS = 1e-5  # BatchNorm2d default eps


def _basic_block_kernel(x_ref, w1_ref, w2_ref, pmat_ref,
                        g1_ref, b1_ref, g2_ref, b2_ref,
                        out1_ref, out2_ref, *, H):
    """Fused conv1+bn1+relu, conv2+bn2, residual add + relu (lane-dense layout)."""
    x = x_ref[...]                                           # (R, W*C) f32
    R = x.shape[0]
    # Image-row index of each slab row (for the conv's H-dimension zero padding).
    h = lax.broadcasted_iota(jnp.int32, (R, 1), 0) % H

    def conv3x3(a, w_ref):
        # kh=0 tap needs x[r-1] (zero at top image row), kh=2 needs x[r+1] (zero at
        # bottom image row).  Shifts on the XLU (pltpu.roll), boundary zeroing on the
        # VPU, then one lane-concatenated K = 3*W*Cin MXU matmul per conv.
        up = jnp.where(h >= 1, pltpu.roll(a, shift=1, axis=0), 0.0)       # x[r-1]
        dn = jnp.where(h <= H - 2, pltpu.roll(a, shift=R - 1, axis=0), 0.0)  # x[r+1]
        taps = jnp.concatenate([up, a, dn], axis=-1).astype(jnp.bfloat16)  # (R, 3L)
        return jnp.dot(taps, w_ref[...], preferred_element_type=jnp.float32)

    def batchnorm(acc, gamma_ref, beta_ref):
        # Training-mode BN over the full (N,H,W) population, per channel, in f32.
        L = acc.shape[1]
        s = jnp.sum(acc, axis=0, keepdims=True)              # (1, L)
        ss = jnp.sum(acc * acc, axis=0, keepdims=True)       # (1, L)
        # Single grouping matmul for both statistics: [s | ss] (lane-aligned concat)
        # against the block-diagonal grouping matrix (1/(N*H*W) already folded in).
        stats = jnp.dot(jnp.concatenate([s, ss], axis=-1), pmat_ref[...],
                        preferred_element_type=jnp.float32)  # (1, 2L)
        mean = stats[:, :L]
        var = jnp.maximum(stats[:, L:] - mean * mean, 0.0)   # clamp cancellation
        return (acc - mean) * lax.rsqrt(var + EPS) * gamma_ref[...] + beta_ref[...]

    y1 = jnp.maximum(batchnorm(conv3x3(x, w1_ref), g1_ref, b1_ref), 0.0)
    out1_ref[...] = y1                                       # dense, unmasked store
    y2 = batchnorm(conv3x3(y1, w2_ref), g2_ref, b2_ref)
    out2_ref[...] = jnp.maximum(y2 + x, 0.0)                 # identity residual + relu


def _conv3x3_band_weight(wt, W):
    """Torch (Cout, Cin, 3, 3) conv weight -> (3*W*Cin, W*Cout) banded weight.

    For tap kh, block (wi, wo) equals wt[:, :, kh, kw].T whenever wi == wo + (kw - 1),
    else zero (folds the kw taps and the W-dimension zero padding); the three kh taps
    are stacked along K so each conv is exactly one matmul.
    """
    Cout, Cin = wt.shape[0], wt.shape[1]
    mats = []
    for kh in range(3):
        m = jnp.zeros((W * Cin, W * Cout), jnp.float32)
        for kw in range(3):
            band = jnp.eye(W, k=-(kw - 1), dtype=jnp.float32)   # 1 iff wi == wo+(kw-1)
            blk = wt[:, :, kh, kw].T.astype(jnp.float32)         # (Cin, Cout)
            m = m + jnp.kron(band, blk)
        mats.append(m)
    return jnp.concatenate(mats, axis=0)


def prepare_basic_block(params, N, H, W):
    """Precompute all kernel constants ONCE per weight update (hoisted out of the
    per-forward path).  Conv biases are intentionally dropped: a constant per-channel
    bias cancels exactly under training-mode BatchNorm.  (Eval-mode / folded BN would
    need them back.)"""
    w1, b1, g1, be1, w2, b2, g2, be2 = params
    del b1, b2
    P, Cin = w1.shape[0], w1.shape[1]
    assert Cin == P, "downsample is None -> residual requires inplanes == planes"
    inv_count = 1.0 / float(N * H * W)
    # Per-channel grouping matrix (lane = w*C + c): pmat[wc, w'c'] = (c == c')/(N*H*W),
    # block-diagonally duplicated so mean and E[x^2] come from one matmul.
    pmat = jnp.kron(jnp.ones((W, W), jnp.float32),
                    jnp.eye(P, dtype=jnp.float32)) * inv_count
    pmat2 = jnp.kron(jnp.eye(2, dtype=jnp.float32), pmat)        # (2*W*P, 2*W*P) f32
    return dict(
        w1cat=_conv3x3_band_weight(w1, W).astype(jnp.bfloat16),  # (3*W*C, W*P)
        w2cat=_conv3x3_band_weight(w2, W).astype(jnp.bfloat16),  # (3*W*P, W*P)
        pmat=pmat2,
        g1d=jnp.tile(g1.astype(jnp.float32), W)[None, :],
        b1d=jnp.tile(be1.astype(jnp.float32), W)[None, :],
        g2d=jnp.tile(g2.astype(jnp.float32), W)[None, :],
        b2d=jnp.tile(be2.astype(jnp.float32), W)[None, :],
    )


@functools.partial(jax.jit, static_argnames=("H",))
def basic_block_forward_dense(x_dense, prep, *, H):
    """Forward in the lane-dense (N*H, W*C) layout.  Chained blocks should stay in this
    layout; the NCHW repack in basic_block_forward is optional plumbing."""
    R, L = x_dense.shape
    Lp = prep["w1cat"].shape[1]
    assert L == Lp, "identity residual requires matching channel count"

    flops = (2 * R * (3 * L) * Lp          # conv1 (single banded matmul)
             + 2 * R * (3 * Lp) * Lp       # conv2
             + 2 * 2 * (2 * Lp) * (2 * Lp))  # BN grouping matmuls (2 BNs)
    bytes_accessed = (int(x_dense.size) * 4
                      + sum(int(v.size) * v.dtype.itemsize for v in prep.values())
                      + 2 * R * Lp * 4)
    cost = pl.CostEstimate(flops=flops, transcendentals=2 * Lp,
                           bytes_accessed=bytes_accessed)

    vmem = pl.BlockSpec(memory_space=pltpu.MemorySpace.VMEM)
    out1d, out2d = pl.pallas_call(
        functools.partial(_basic_block_kernel, H=H),
        out_shape=(jax.ShapeDtypeStruct((R, Lp), jnp.float32),
                   jax.ShapeDtypeStruct((R, Lp), jnp.float32)),
        in_specs=[vmem] * 8,
        out_specs=(vmem, vmem),
        compiler_params=pltpu.CompilerParams(vmem_limit_bytes=32 * 1024 * 1024),
        cost_estimate=cost,
    )(x_dense, prep["w1cat"], prep["w2cat"], prep["pmat"],
      prep["g1d"], prep["b1d"], prep["g2d"], prep["b2d"])
    return out1d, out2d


def basic_block_forward(x_nchw, prep, *, dense_outputs=False):
    """BasicBlock forward (training-mode BN). Returns (out2, feature_list)."""
    N, C, H, W = x_nchw.shape
    # Lane-dense activation slab: rows = (n, h), lanes = (w, c).
    x_dense = jnp.transpose(x_nchw, (0, 2, 3, 1)).reshape(N * H, W * C).astype(jnp.float32)
    out1d, out2d = basic_block_forward_dense(x_dense, prep, H=H)
    if dense_outputs:          # preferred when chaining blocks (no HBM repack traffic)
        return out2d, [out1d, out2d]
    def to_nchw(d):
        return d.reshape(N, H, W, -1).transpose(0, 3, 1, 2)
    out1, out2 = to_nchw(out1d), to_nchw(out2d)
    return out2, [out1, out2]


def _reference_forward(x, params):
    """Pure-JAX f32 reference (for correctness check)."""
    w1, b1, g1, be1, w2, b2, g2, be2 = params

    def conv(x, w, b):
        y = lax.conv_general_dilated(
            x, w, window_strides=(1, 1), padding=((1, 1), (1, 1)),
            dimension_numbers=('NCHW', 'OIHW', 'NCHW'))
        return y + b[None, :, None, None]

    def bn(x, g, be):
        m = jnp.mean(x, axis=(0, 2, 3), keepdims=True)
        v = jnp.mean((x - m) ** 2, axis=(0, 2, 3), keepdims=True)
        return (x - m) * lax.rsqrt(v + EPS) * g[None, :, None, None] \
            + be[None, :, None, None]

    out1 = jax.nn.relu(bn(conv(x, w1, b1), g1, be1))
    out2 = jax.nn.relu(bn(conv(out1, w2, b2), g2, be2) + x)
    return out2, out1


if __name__ == "__main__":
    # batch=2, inplanes=planes=8, spatial 16x16, stride=1, downsample=None.
    # W*C = 16*8 = 128 -> perfectly lane-dense activation slabs.
    N, C, H, W = 2, 8, 16, 16
    key = jax.random.PRNGKey(0)
    ks = jax.random.split(key, 9)

    fan_in = C * 9
    std = (2.0 / fan_in) ** 0.5
    w1 = jax.random.normal(ks[0], (C, C, 3, 3), jnp.float32) * std
    b1 = jax.random.normal(ks[1], (C,), jnp.float32) * 0.05
    w2 = jax.random.normal(ks[2], (C, C, 3, 3), jnp.float32) * std
    b2 = jax.random.normal(ks[3], (C,), jnp.float32) * 0.05
    g1 = 1.0 + 0.1 * jax.random.normal(ks[4], (C,), jnp.float32)
    be1 = 0.05 * jax.random.normal(ks[5], (C,), jnp.float32)
    g2 = 1.0 + 0.1 * jax.random.normal(ks[6], (C,), jnp.float32)
    be2 = 0.05 * jax.random.normal(ks[7], (C,), jnp.float32)
    params = (w1, b1, g1, be1, w2, b2, g2, be2)

    x = jax.random.normal(ks[8], (N, C, H, W), jnp.float32)

    prep = prepare_basic_block(params, N, H, W)   # constants built once per weights
    out2, feats = basic_block_forward(x, prep)
    out2 = jax.block_until_ready(out2)
    feats = [jax.block_until_ready(f) for f in feats]

    ref2, ref1 = _reference_forward(x, params)
    # bf16 MXU operands -> compare against the f32 reference with loosened tolerance.
    assert jnp.allclose(out2, ref2, atol=5e-2, rtol=5e-2), "out2 mismatch vs reference"
    assert jnp.allclose(feats[0], ref1, atol=5e-2, rtol=5e-2), "out1 mismatch vs reference"

    print("KERNEL_OK")
</pallas_src>

<mosaic_0001>
module attributes {stable_mosaic.version = 11 : i64} {
  func.func @_basic_block_kernel(%arg0: memref<32x128xf32, #tpu.memory_space<vmem>>, %arg1: memref<384x128xbf16, #tpu.memory_space<vmem>>, %arg2: memref<384x128xbf16, #tpu.memory_space<vmem>>, %arg3: memref<256x256xf32, #tpu.memory_space<vmem>>, %arg4: memref<1x128xf32, #tpu.memory_space<vmem>>, %arg5: memref<1x128xf32, #tpu.memory_space<vmem>>, %arg6: memref<1x128xf32, #tpu.memory_space<vmem>>, %arg7: memref<1x128xf32, #tpu.memory_space<vmem>>, %arg8: memref<32x128xf32, #tpu.memory_space<vmem>>, %arg9: memref<32x128xf32, #tpu.memory_space<vmem>>) attributes {dimension_semantics = [], scalar_prefetch = 0 : i64, scratch_operands = 0 : i64, tpu.core_type = #tpu.core_type<tc>} {
    %c0 = arith.constant 0 : index
    %c0_0 = arith.constant 0 : index
    %0 = vector.load %arg0[%c0, %c0_0] : memref<32x128xf32, #tpu.memory_space<vmem>>, vector<32x128xf32>
    %1 = tpu.iota {dimensions = array<i32: 0>} : vector<32x1xi32>
    %c16_i32 = arith.constant 16 : i32
    %c0_i32 = arith.constant 0 : i32
    %2 = arith.cmpi eq, %c16_i32, %c0_i32 : i32
    %c1_i32 = arith.constant 1 : i32
    %3 = arith.select %2, %c1_i32, %c16_i32 : i32
    %4 = vector.broadcast %3 : i32 to vector<32x1xi32>
    %5 = arith.remsi %1, %4 : vector<32x1xi32>
    %c0_i32_1 = arith.constant 0 : i32
    %6 = vector.broadcast %c0_i32_1 : i32 to vector<32x1xi32>
    %7 = arith.cmpi ne, %5, %6 : vector<32x1xi32>
    %c0_i32_2 = arith.constant 0 : i32
    %8 = vector.broadcast %c0_i32_2 : i32 to vector<32x1xi32>
    %9 = arith.cmpi slt, %5, %8 : vector<32x1xi32>
    %c0_i32_3 = arith.constant 0 : i32
    %10 = arith.cmpi slt, %3, %c0_i32_3 : i32
    %11 = vector.broadcast %10 : i1 to vector<32x1xi1>
    %12 = vector.broadcast %11 : vector<32x1xi1> to vector<32x1xi1>
    %13 = arith.xori %9, %12 : vector<32x1xi1>
    %14 = arith.andi %13, %7 : vector<32x1xi1>
    %15 = vector.broadcast %3 : i32 to vector<32x1xi32>
    %16 = arith.addi %5, %15 : vector<32x1xi32>
    %17 = arith.select %14, %16, %5 : vector<32x1xi1>, vector<32x1xi32>
    %c1_i32_4 = arith.constant 1 : i32
    %18 = vector.broadcast %c1_i32_4 : i32 to vector<32x1xi32>
    %19 = arith.cmpi sge, %17, %18 : vector<32x1xi32>
    %c1_i32_5 = arith.constant 1 : i32
    %20 = tpu.dynamic_rotate %0 by %c1_i32_5 dim 0 : vector<32x128xf32>, i32 -> vector<32x128xf32>
    %cst = arith.constant 0.000000e+00 : f32
    %21 = vector.shape_cast %19 : vector<32x1xi1> to vector<32x1xi1>
    %22 = vector.broadcast %21 : vector<32x1xi1> to vector<32x128xi1>
    %23 = vector.broadcast %cst : f32 to vector<32x128xf32>
    %24 = arith.select %22, %20, %23 : vector<32x128xi1>, vector<32x128xf32>
    %c14_i32 = arith.constant 14 : i32
    %25 = vector.broadcast %c14_i32 : i32 to vector<32x1xi32>
    %26 = arith.cmpi sle, %17, %25 : vector<32x1xi32>
    %c31_i32 = arith.constant 31 : i32
    %27 = tpu.dynamic_rotate %0 by %c31_i32 dim 0 : vector<32x128xf32>, i32 -> vector<32x128xf32>
    %cst_6 = arith.constant 0.000000e+00 : f32
    %28 = vector.shape_cast %26 : vector<32x1xi1> to vector<32x1xi1>
    %29 = vector.broadcast %28 : vector<32x1xi1> to vector<32x128xi1>
    %30 = vector.broadcast %cst_6 : f32 to vector<32x128xf32>
    %31 = arith.select %29, %27, %30 : vector<32x128xi1>, vector<32x128xf32>
    %32 = tpu.concatenate %24, %0, %31 in 1 : vector<32x128xf32>, vector<32x128xf32>, vector<32x128xf32> -> vector<32x384xf32>
    %33 = arith.truncf %32 : vector<32x384xf32> to vector<32x384xbf16>
    %c0_7 = arith.constant 0 : index
    %c0_8 = arith.constant 0 : index
    %34 = vector.load %arg1[%c0_7, %c0_8] : memref<384x128xbf16, #tpu.memory_space<vmem>>, vector<384x128xbf16>
    %cst_9 = arith.constant dense<0.000000e+00> : vector<32x128xf32>
    %35 = tpu.matmul %33, %34, %cst_9 {dimension_numbers = #tpu.dot_dimension_numbers<[1], [0], [0], [1], [0, 0, 1, 1], [], []>} : vector<32x384xbf16>, vector<384x128xbf16>, vector<32x128xf32> -> vector<32x128xf32>
    %cst_10 = arith.constant dense<0.000000e+00> : vector<128xf32>
    %36 = vector.multi_reduction <add>, %35, %cst_10 [0] : vector<32x128xf32> to vector<128xf32>
    %37 = vector.shape_cast %36 : vector<128xf32> to vector<1x128xf32>
    %38 = arith.mulf %35, %35 : vector<32x128xf32>
    %cst_11 = arith.constant dense<0.000000e+00> : vector<128xf32>
    %39 = vector.multi_reduction <add>, %38, %cst_11 [0] : vector<32x128xf32> to vector<128xf32>
    %40 = vector.shape_cast %39 : vector<128xf32> to vector<1x128xf32>
    %41 = tpu.concatenate %37, %40 in 1 : vector<1x128xf32>, vector<1x128xf32> -> vector<1x256xf32>
    %c0_12 = arith.constant 0 : index
    %c0_13 = arith.constant 0 : index
    %42 = vector.load %arg3[%c0_12, %c0_13] : memref<256x256xf32, #tpu.memory_space<vmem>>, vector<256x256xf32>
    %cst_14 = arith.constant dense<0.000000e+00> : vector<1x256xf32>
    %43 = tpu.matmul %41, %42, %cst_14 {dimension_numbers = #tpu.dot_dimension_numbers<[1], [0], [0], [1], [0, 0, 1, 1], [], []>} : vector<1x256xf32>, vector<256x256xf32>, vector<1x256xf32> -> vector<1x256xf32>
    %44 = vector.extract_strided_slice %43 {offsets = [0, 0], sizes = [1, 128], strides = [1, 1]} : vector<1x256xf32> to vector<1x128xf32>
    %45 = vector.extract_strided_slice %43 {offsets = [0, 128], sizes = [1, 128], strides = [1, 1]} : vector<1x256xf32> to vector<1x128xf32>
    %46 = arith.mulf %44, %44 : vector<1x128xf32>
    %47 = arith.subf %45, %46 : vector<1x128xf32>
    %cst_15 = arith.constant 0.000000e+00 : f32
    %48 = vector.broadcast %cst_15 : f32 to vector<1x128xf32>
    %49 = arith.maximumf %47, %48 : vector<1x128xf32>
    %50 = vector.broadcast %44 : vector<1x128xf32> to vector<32x128xf32>
    %51 = arith.subf %35, %50 : vector<32x128xf32>
    %cst_16 = arith.constant 9.99999974E-6 : f32
    %52 = vector.broadcast %cst_16 : f32 to vector<1x128xf32>
    %53 = arith.addf %49, %52 : vector<1x128xf32>
    %54 = math.rsqrt %53 : vector<1x128xf32>
    %55 = vector.broadcast %54 : vector<1x128xf32> to vector<32x128xf32>
    %56 = arith.mulf %51, %55 : vector<32x128xf32>
    %c0_17 = arith.constant 0 : index
    %c0_18 = arith.constant 0 : index
    %57 = vector.load %arg4[%c0_17, %c0_18] : memref<1x128xf32, #tpu.memory_space<vmem>>, vector<1x128xf32>
    %58 = vector.broadcast %57 : vector<1x128xf32> to vector<32x128xf32>
    %59 = arith.mulf %56, %58 : vector<32x128xf32>
    %c0_19 = arith.constant 0 : index
    %c0_20 = arith.constant 0 : index
    %60 = vector.load %arg5[%c0_19, %c0_20] : memref<1x128xf32, #tpu.memory_space<vmem>>, vector<1x128xf32>
    %61 = vector.broadcast %60 : vector<1x128xf32> to vector<32x128xf32>
    %62 = arith.addf %59, %61 : vector<32x128xf32>
    %cst_21 = arith.constant 0.000000e+00 : f32
    %63 = vector.broadcast %cst_21 : f32 to vector<32x128xf32>
    %64 = arith.maximumf %62, %63 : vector<32x128xf32>
    %c0_22 = arith.constant 0 : index
    %c0_23 = arith.constant 0 : index
    %65 = vector.load %arg8[%c0_22, %c0_23] : memref<32x128xf32, #tpu.memory_space<vmem>>, vector<32x128xf32>
    tpu.vector_store %arg8[%c0_22, %c0_23], %64 {strides = array<i32>} : memref<32x128xf32, #tpu.memory_space<vmem>>, vector<32x128xf32>,
    %c1_i32_24 = arith.constant 1 : i32
    %66 = vector.broadcast %c1_i32_24 : i32 to vector<32x1xi32>
    %67 = arith.cmpi sge, %17, %66 : vector<32x1xi32>
    %c1_i32_25 = arith.constant 1 : i32
    %68 = tpu.dynamic_rotate %64 by %c1_i32_25 dim 0 : vector<32x128xf32>, i32 -> vector<32x128xf32>
    %cst_26 = arith.constant 0.000000e+00 : f32
    %69 = vector.shape_cast %67 : vector<32x1xi1> to vector<32x1xi1>
    %70 = vector.broadcast %69 : vector<32x1xi1> to vector<32x128xi1>
    %71 = vector.broadcast %cst_26 : f32 to vector<32x128xf32>
    %72 = arith.select %70, %68, %71 : vector<32x128xi1>, vector<32x128xf32>
    %c14_i32_27 = arith.constant 14 : i32
    %73 = vector.broadcast %c14_i32_27 : i32 to vector<32x1xi32>
    %74 = arith.cmpi sle, %17, %73 : vector<32x1xi32>
    %c31_i32_28 = arith.constant 31 : i32
    %75 = tpu.dynamic_rotate %64 by %c31_i32_28 dim 0 : vector<32x128xf32>, i32 -> vector<32x128xf32>
    %cst_29 = arith.constant 0.000000e+00 : f32
    %76 = vector.shape_cast %74 : vector<32x1xi1> to vector<32x1xi1>
    %77 = vector.broadcast %76 : vector<32x1xi1> to vector<32x128xi1>
    %78 = vector.broadcast %cst_29 : f32 to vector<32x128xf32>
    %79 = arith.select %77, %75, %78 : vector<32x128xi1>, vector<32x128xf32>
    %80 = tpu.concatenate %72, %64, %79 in 1 : vector<32x128xf32>, vector<32x128xf32>, vector<32x128xf32> -> vector<32x384xf32>
    %81 = arith.truncf %80 : vector<32x384xf32> to vector<32x384xbf16>
    %c0_30 = arith.constant 0 : index
    %c0_31 = arith.constant 0 : index
    %82 = vector.load %arg2[%c0_30, %c0_31] : memref<384x128xbf16, #tpu.memory_space<vmem>>, vector<384x128xbf16>
    %cst_32 = arith.constant dense<0.000000e+00> : vector<32x128xf32>
    %83 = tpu.matmul %81, %82, %cst_32 {dimension_numbers = #tpu.dot_dimension_numbers<[1], [0], [0], [1], [0, 0, 1, 1], [], []>} : vector<32x384xbf16>, vector<384x128xbf16>, vector<32x128xf32> -> vector<32x128xf32>
    %cst_33 = arith.constant dense<0.000000e+00> : vector<128xf32>
    %84 = vector.multi_reduction <add>, %83, %cst_33 [0] : vector<32x128xf32> to vector<128xf32>
    %85 = vector.shape_cast %84 : vector<128xf32> to vector<1x128xf32>
    %86 = arith.mulf %83, %83 : vector<32x128xf32>
    %cst_34 = arith.constant dense<0.000000e+00> : vector<128xf32>
    %87 = vector.multi_reduction <add>, %86, %cst_34 [0] : vector<32x128xf32> to vector<128xf32>
    %88 = vector.shape_cast %87 : vector<128xf32> to vector<1x128xf32>
    %89 = tpu.concatenate %85, %88 in 1 : vector<1x128xf32>, vector<1x128xf32> -> vector<1x256xf32>
    %c0_35 = arith.constant 0 : index
    %c0_36 = arith.constant 0 : index
    %90 = vector.load %arg3[%c0_35, %c0_36] : memref<256x256xf32, #tpu.memory_space<vmem>>, vector<256x256xf32>
    %cst_37 = arith.constant dense<0.000000e+00> : vector<1x256xf32>
    %91 = tpu.matmul %89, %90, %cst_37 {dimension_numbers = #tpu.dot_dimension_numbers<[1], [0], [0], [1], [0, 0, 1, 1], [], []>} : vector<1x256xf32>, vector<256x256xf32>, vector<1x256xf32> -> vector<1x256xf32>
    %92 = vector.extract_strided_slice %91 {offsets = [0, 0], sizes = [1, 128], strides = [1, 1]} : vector<1x256xf32> to vector<1x128xf32>
    %93 = vector.extract_strided_slice %91 {offsets = [0, 128], sizes = [1, 128], strides = [1, 1]} : vector<1x256xf32> to vector<1x128xf32>
    %94 = arith.mulf %92, %92 : vector<1x128xf32>
    %95 = arith.subf %93, %94 : vector<1x128xf32>
    %cst_38 = arith.constant 0.000000e+00 : f32
    %96 = vector.broadcast %cst_38 : f32 to vector<1x128xf32>
    %97 = arith.maximumf %95, %96 : vector<1x128xf32>
    %98 = vector.broadcast %92 : vector<1x128xf32> to vector<32x128xf32>
    %99 = arith.subf %83, %98 : vector<32x128xf32>
    %cst_39 = arith.constant 9.99999974E-6 : f32
    %100 = vector.broadcast %cst_39 : f32 to vector<1x128xf32>
    %101 = arith.addf %97, %100 : vector<1x128xf32>
    %102 = math.rsqrt %101 : vector<1x128xf32>
    %103 = vector.broadcast %102 : vector<1x128xf32> to vector<32x128xf32>
    %104 = arith.mulf %99, %103 : vector<32x128xf32>
    %c0_40 = arith.constant 0 : index
    %c0_41 = arith.constant 0 : index
    %105 = vector.load %arg6[%c0_40, %c0_41] : memref<1x128xf32, #tpu.memory_space<vmem>>, vector<1x128xf32>
    %106 = vector.broadcast %105 : vector<1x128xf32> to vector<32x128xf32>
    %107 = arith.mulf %104, %106 : vector<32x128xf32>
    %c0_42 = arith.constant 0 : index
    %c0_43 = arith.constant 0 : index
    %108 = vector.load %arg7[%c0_42, %c0_43] : memref<1x128xf32, #tpu.memory_space<vmem>>, vector<1x128xf32>
    %109 = vector.broadcast %108 : vector<1x128xf32> to vector<32x128xf32>
    %110 = arith.addf %107, %109 : vector<32x128xf32>
    %111 = arith.addf %110, %0 : vector<32x128xf32>
    %cst_44 = arith.constant 0.000000e+00 : f32
    %112 = vector.broadcast %cst_44 : f32 to vector<32x128xf32>
    %113 = arith.maximumf %111, %112 : vector<32x128xf32>
    %c0_45 = arith.constant 0 : index
    %c0_46 = arith.constant 0 : index
    %114 = vector.load %arg9[%c0_45, %c0_46] : memref<32x128xf32, #tpu.memory_space<vmem>>, vector<32x128xf32>
    tpu.vector_store %arg9[%c0_45, %c0_46], %113 {strides = array<i32>} : memref<32x128xf32, #tpu.memory_space<vmem>>, vector<32x128xf32>,
    return
  }
}

</mosaic_0001>

<bundles_post_ra>
// kernel: basic_block_forward_dense.1
= control target key start
LH: loop header
LB: loop body
LE: loop exit
PB: predicated region body
PF: predicated region fallthrough
CT: control target
= control target key end

     0   :  { %15 = vsyncpa [#allocation3], 0  ;;  %s2190_s0 = inlined_call_operand.hbm [shape: f32[32,128], index: 0, kind: input, shape index: {}]   ;;  %s2191_s1 = inlined_call_operand.hbm [shape: bf16[384,128], index: 1, kind: input, shape index: {}]   ;;  %s2192_s2 = inlined_call_operand.hbm [shape: bf16[384,128], index: 2, kind: input, shape index: {}]   ;;  %s2193_s3 = inlined_call_operand.hbm [shape: f32[256,256], index: 3, kind: input, shape index: {}]   ;;  %s2194_s4 = inlined_call_operand.vmem [shape: f32[1,128], index: 4, kind: input, shape index: {}]   ;;  %s2195_s5 = inlined_call_operand.hbm [shape: f32[1,128], index: 5, kind: input, shape index: {}]   ;;  %s2196_s6 = inlined_call_operand.vmem [shape: f32[1,128], index: 6, kind: input, shape index: {}]   ;;  %s2197_s7 = inlined_call_operand.vmem [shape: f32[1,128], index: 7, kind: input, shape index: {}]   ;;  %s2198_s8 = inlined_call_operand.hbm [shape: f32[32,128], index: 8, kind: output, shape index: {0}]   ;;  %s2199_s9 = inlined_call_operand.hbm [shape: f32[32,128], index: 9, kind: output, shape index: {1}]  }
   0x1   :  { %16 = vsyncpa [#allocation6], 0 }
   0x2   :  { %17 = vsyncpa [#allocation9], 0 }
   0x3   :  { %18 = vsyncpa [#allocation4], 0 }
   0x4   :  { %19 = vsyncpa [#allocation13], 0  ;;  %s1690_s30 = smov [#allocation5]  }
   0x5   :  { %s37_s10 = sshll.u32 %s1690_s30, 4  ;;  %s38_s10 = int_to_ptr.vmem [resolvable:$true] %s37_s10 }
   0x6   :  { %s1548_s11 = scalar_lea.vmem %s38_s10, 3072  ;;  %p1553_p1 = scmp.lt.s32.totalorder %s38_s10, %s38_s10 }
   0x7   :  { %p1549_p0 = scmp.ne.s32.totalorder %s38_s10, %s1548_s11  ;;  %p1554_p2 = scmp.lt.s32.totalorder %s1548_s11, %s1548_s11 }
   0x9   :  { %p1555_p3 = por %p1554_p2, %p1553_p1 }
   0xb   :  { %p1556_p4 = pnand %p1555_p3, %p1549_p0 }
   0xd   :  { %1559 = shalt.err (!%p1556_p4)
}
   0xe   :  { %s1691_s12 = smov 64   ;;  %s1692_s13 = smov 4  }
   0xf   :  { %43 = dma.hbm_to_vmem [thread:$0]  %s2191_s1, 3072, %s38_s10, [#allocation6], %s1691_s12, %s1691_s12, %s1692_s13  }
  0x10   :  { %s1693_s16 = smov [#allocation8]  }
  0x11   :  { %s61_s17 = sshll.u32 %s1693_s16, 4  ;;  %s62_s17 = int_to_ptr.vmem [resolvable:$true] %s61_s17 }
  0x12   :  { %s1568_s18 = scalar_lea.vmem %s62_s17, 8192  ;;  %p1573_p6 = scmp.lt.s32.totalorder %s62_s17, %s62_s17 }
  0x13   :  { %p1569_p5 = scmp.ne.s32.totalorder %s62_s17, %s1568_s18  ;;  %p1574_p7 = scmp.lt.s32.totalorder %s1568_s18, %s1568_s18 }
  0x15   :  { %p1575_p8 = por %p1574_p7, %p1573_p6 }
  0x17   :  { %p1576_p9 = pnand %p1575_p8, %p1569_p5 }
  0x19   :  { %1579 = shalt.err (!%p1576_p9)
}
  0x1a   :  { %s1694_s19 = smov 256   ;;  %s1695_s20 = smov 16  }
  0x1b   :  { %67 = dma.hbm_to_vmem [thread:$0]  %s2193_s3, 8192, %s62_s17, [#allocation9], %s1694_s19, %s1694_s19, %s1695_s20  }
  0x1c   :  { %s1696_s23 = smov [#allocation2]  }
  0x1d   :  { %s25_s24 = sshll.u32 %s1696_s23, 4  ;;  %s26_s24 = int_to_ptr.vmem [resolvable:$true] %s25_s24 }
  0x1e   :  { %s1588_s1 = scalar_lea.vmem %s26_s24, 512  ;;  %p1593_p11 = scmp.lt.s32.totalorder %s26_s24, %s26_s24 }
  0x1f   :  { %p1589_p10 = scmp.ne.s32.totalorder %s26_s24, %s1588_s1  ;;  %p1594_p12 = scmp.lt.s32.totalorder %s1588_s1, %s1588_s1 }
  0x21   :  { %p1595_p13 = por %p1594_p12, %p1593_p11 }
  0x23   :  { %p1596_p0 = pnand %p1595_p13, %p1589_p10 }
  0x25   :  { %1599 = shalt.err (!%p1596_p0)
}
  0x26   :  { %s1697_s25 = smov 128   ;;  %s1698_s26 = smov 8  }
  0x27   :  { %31 = dma.hbm_to_vmem [thread:$0]  %s2190_s0, 512, %s26_s24, [#allocation3], %s1697_s25, %s1697_s25, %s1698_s26  }
  0x28   :  { %s1699_s3 = smov [#allocation7]   ;;  %s1700_s30 = smov [#allocation10]  }
  0x29   :  { %s49_s29 = sshll.u32 %s1699_s3, 4  ;;  %s76_s10 = sshll.u32 %s1700_s30, 4  ;;  %s50_s29 = int_to_ptr.vmem [resolvable:$true] %s49_s29  ;;  %s77_s10 = int_to_ptr.vmem [resolvable:$true] %s76_s10 }
  0x2a   :  { %s1608_s11 = scalar_lea.vmem %s50_s29, 3072  ;;  %p1613_p2 = scmp.lt.s32.totalorder %s50_s29, %s50_s29 }
  0x2b   :  { %p1609_p1 = scmp.ne.s32.totalorder %s50_s29, %s1608_s11  ;;  %p1614_p3 = scmp.lt.s32.totalorder %s1608_s11, %s1608_s11 }
  0x2d   :  { %p1615_p4 = por %p1614_p3, %p1613_p2 }
  0x2f   :  { %p1616_p5 = pnand %p1615_p4, %p1609_p1 }
  0x31   :  { %1619 = shalt.err (!%p1616_p5)
}
  0x32   :  { %55 = dma.hbm_to_vmem [thread:$0]  %s2192_s2, 3072, %s50_s29, [#allocation6], %s1691_s12, %s1691_s12, %s1692_s13  }
  0x33   :  { %s1628_s0 = scalar_lea.vmem %s77_s10, 16  ;;  %s1632_s16 = scalar_lea.vmem %s77_s10, 32 }
  0x34   :  { %p1629_p6 = scmp.ne.s32.totalorder %s77_s10, %s1628_s0  ;;  %p1633_p7 = scmp.lt.s32.totalorder %s77_s10, %s77_s10 }
  0x35   :  { %p1634_p8 = scmp.lt.s32.totalorder %s1632_s16, %s1628_s0 }
  0x37   :  { %p1635_p9 = por %p1634_p8, %p1633_p7 }
  0x39   :  { %p1636_p10 = pnand %p1635_p9, %p1629_p6 }
  0x3b   :  { %1639 = shalt.err (!%p1636_p10)
}
  0x3c   :  { %79 = dma.hbm_to_vmem [thread:$0]  %s2195_s5, 16, %s77_s10, [#allocation9]  }
  0x3d   :  { %1680 = dma.done.wait [#allocation3], 512  }
  0x3e   :  { %1681 = vsyncadd [#allocation3], 4294966784 }
  0x3f   :  { %1682 = dma.done.wait [#allocation6], 6144  }
  0x40   :  { %1683 = vsyncadd [#allocation6], 4294961152 }
  0x41   :  { %1684 = dma.done.wait [#allocation9], 8208  }
  0x42   :  { %1685 = vsyncadd [#allocation9], 4294959088  ;;  %v1484_v0 = vld [vmem:[#allocation5 + $0x78] sm:$0xff]   ;;  %v1486_v2 = vld [vmem:[#allocation5 + $0x70] sm:$0xff]   ;;  %v104_v7 = vlaneseq  ;;  %vm1701_vm3 = vmmov 1   ;;  %v2233_v34 = vmov 0 }
  0x43   :  { %v1485_v1 = vld [vmem:[#allocation5 + $0x38] sm:$0xff]   ;;  %1354 = vmatprep.subr.bf16.mxu1 %v1484_v0  ;;  %v1487_v3 = vld [vmem:[#allocation5 + $0x30] sm:$0xff]   ;;  %v1488_v4 = vld [vmem:[#allocation5 + $0x68] sm:$0xff]   ;;  %v2240_v47 = vmov 0  ;;  %v2243_v48 = vmov 0 }
  0x44   :  { %1355 = vmatpush3.bf16.msra.mxu1 %v1485_v1  ;;  %v1489_v5 = vld [vmem:[#allocation5 + $0x28] sm:$0xff]   ;;  %v1490_v6 = vld [vmem:[#allocation5 + $0x60] sm:$0xff]   ;;  %v1492_v9 = vld [vmem:[#allocation5 + $0x58] sm:$0xff]   ;;  %v1778_v10 = vshrl.u32 %v104_v7, 7 }
  0x45   :  { %1356 = vmatprep.subr.bf16.mxu1 %v1486_v2  ;;  %v1491_v8 = vld [vmem:[#allocation5 + $0x20] sm:$0xff]   ;;  %v1493_v11 = vld [vmem:[#allocation5 + $0x18] sm:$0xff]   ;;  %v1494_v12 = vld [vmem:[#allocation5 + $0x50] sm:$0xff]  }
  0x46   :  { %2230 = vst [vmem:[#allocation19_spill] sm:$0xff] %v1778_v10  ;;  %v1780_v13 = vld [vmem:[#allocation2] sm:$0xff]  ;;  %v101_v14 = vld [vmem:[#allocation2 + $0x8] sm:$0xff]  ;;  %v113_v15 = vand.u32 15, %v1778_v10  ;;  %v107_v16 = vadd.s32 16, %v1778_v10  ;;  %v1495_v17 = vld [vmem:[#allocation5 + $0x10] sm:$0xff]  }
  0x47   :  { %v1496_v18 = vld [vmem:[#allocation5 + $0x48] sm:$0xff]   ;;  %v208_v19 = vpack.c.bf16 %v101_v14, %v1780_v13  ;;  %v106_v20 = vadd.s32 8, %v1778_v10  ;;  %v1786_v21 = vld [vmem:[#allocation2 + $0x18] sm:$0xff]  ;;  %v1498_v25 = vld [vmem:[#allocation5 + $0x40] sm:$0xff]   ;;  %v161_v26 = vrot.slane %v1780_v13, 7  ;;  %v162_v28 = vrot.slane %v101_v14, 7 }
  0x48   :  { %1357 = vmatpush3.bf16.msra.mxu1 %v1487_v3  ;;  %vm1788_vm0 = vcmp.ge.s32.totalorder %v113_v15, 1  ;;  %v127_v23 = vand.u32 15, %v107_v16  ;;  %v1497_v24 = vld [vmem:[#allocation5 + $0x8] sm:$0xff]   ;;  %v164_v29 = vrot.slane %v1786_v21, 7  ;;  %vm165_vm1 = vcmp.lt.s32.totalorder %v1778_v10, 1  ;;  %v102_v30 = vld [vmem:[#allocation2 + $0x10] sm:$0xff] }
  0x49   :  { %1358 = vmatprep.subr.bf16.mxu1 %v1488_v4  ;;  %437 = vmatprep.mubr.bf16.mxu1 %v208_v19  ;;  %v120_v27 = vand.u32 15, %v106_v20  ;;  %vm190_vm2 = vcmp.lt.s32.totalorder %v1778_v10, 7  ;;  %v1499_v31 = vld [vmem:[#allocation5] sm:$0xff]   ;;  %v186_v32 = vrot.slane %v1780_v13, 1  ;;  %v187_v33 = vrot.slane %v101_v14, 1  ;;  %vm1800_vm4 = vmpackc.low %vm1701_vm3, %vm1788_vm0  ;;  %v1812_v37 = vld [vmem:[#allocation8 + $0xf8] sm:$0xff] }
  0x4a   :  { %v2234_v34 = vsel %vm1800_vm4, 4294967295, %v2233_v34  ;;  %vm1804_vm5 = vcmp.ge.s32.totalorder %v127_v23, 1  ;;  %v168_v38 = vsel %vm165_vm1, %v161_v26, %v162_v28  ;;  %v169_v39 = vsel %vm165_vm1, %v164_v29, %v161_v26  ;;  %v1500_v40 = vld [vmem:[#allocation5 + $0xb8] sm:$0xff]   ;;  %589 = vmatprep.subr.mxu0 %v1812_v37  ;;  %v1819_v43 = vld [vmem:[#allocation8 + $0xf0] sm:$0xff]  ;;  %v1502_v49 = vld [vmem:[#allocation5 + $0xa8] sm:$0xff]  }
  0x4b   :  { %2235 = vst [vmem:[#allocation20_spill] sm:$0xff] %v2234_v34  ;;  %vm1808_vm6 = vcmp.le.s32.totalorder %v120_v27, 14  ;;  %v163_v41 = vrot.slane %v102_v30, 7  ;;  %v188_v42 = vrot.slane %v102_v30, 1  ;;  %590 = vmatpush1.msra.mxu0 %v1819_v43  ;;  %v1303_v44 = vpack.c.bf16 %v168_v38, %v169_v39  ;;  %v1501_v45 = vld [vmem:[#allocation5 + $0xb0] sm:$0xff]   ;;  %vm1826_vm7 = vmpackc.low %vm1701_vm3, %vm1804_vm5  ;;  %v1503_v54 = vld [vmem:[#allocation5 + $0xa0] sm:$0xff]  }
  0x4c   :  { %1359 = vmatpush3.bf16.msra.mxu1 %v1489_v5  ;;  %v211_v46 = vpack.c.bf16 %v1786_v21, %v102_v30  ;;  %v2241_v47 = vsel %vm1826_vm7, 4294967295, %v2240_v47  ;;  %vm1833_vm8 = vmpackc.low %vm1808_vm6, %vm1701_vm3  ;;  %v193_v53 = vsel %vm190_vm2, %v186_v32, %v187_v33  ;;  %v1504_v57 = vld [vmem:[#allocation5 + $0x98] sm:$0xff]   ;;  %v1505_v58 = vld [vmem:[#allocation5 + $0x90] sm:$0xff]   ;;  %v108_v60 = vadd.s32 24, %v1778_v10 }
  0x4d   :  { %1360 = vmatprep.subr.bf16.mxu1 %v1490_v6  ;;  %2242 = vst [vmem:[#allocation21_spill] sm:$0xff] %v2241_v47  ;;  %v2244_v48 = vsel %vm1833_vm8, 4294967295, %v2243_v48  ;;  %v166_v50 = vsel %vm165_vm1, %v163_v41, %v164_v29  ;;  %v167_v51 = vsel %vm165_vm1, %v162_v28, %v163_v41  ;;  %v192_v52 = vsel %vm190_vm2, %v187_v33, %v188_v42  ;;  %v1506_v59 = vld [vmem:[#allocation5 + $0x88] sm:$0xff]   ;;  %v1507_v62 = vld [vmem:[#allocation5 + $0x80] sm:$0xff]   ;;  %v1870_v6 = vld [vmem:[#allocation8 + $0xd8] sm:$0xff] }
  0x4e   :  { %2245 = vst [vmem:[#allocation22_spill] sm:$0xff] %v2244_v48  ;;  %v1306_v55 = vpack.c.bf16 %v166_v50, %v167_v51  ;;  %v1309_v56 = vpack.c.bf16 %v192_v52, %v193_v53  ;;  %v189_v61 = vrot.slane %v1786_v21, 1  ;;  %v134_v63 = vand.u32 15, %v108_v60  ;;  %v1864_v4 = vld [vmem:[#allocation8 + $0xe8] sm:$0xff]  ;;  %v1867_v5 = vld [vmem:[#allocation8 + $0xe0] sm:$0xff]  ;;  %v1873_v7 = vld [vmem:[#allocation8 + $0xd0] sm:$0xff] }
  0x4f   :  { %v2246_v3 = vmov 0  ;;  %591 = vmatprep.subr.mxu0 %v1864_v4  ;;  %v1888_v13 = vld [vmem:[#allocation8 + $0xa8] sm:$0xff]  ;;  %v1890_v14 = vld [vmem:[#allocation8 + $0xa0] sm:$0xff]  ;;  %v1892_v15 = vld [vmem:[#allocation8 + $0x98] sm:$0xff] }
  0x50   :  { %1361 = vmatpush3.bf16.msra.mxu1 %v1491_v8  ;;  %v194_v0 = vsel %vm190_vm2, %v189_v61, %v186_v32  ;;  %v191_v1 = vsel %vm190_vm2, %v188_v42, %v189_v61  ;;  %vm185_vm9 = vcmp.le.s32.totalorder %v134_v63, 14  ;;  %592 = vmatpush1.msra.mxu0 %v1867_v5  ;;  %v1876_v8 = vld [vmem:[#allocation8 + $0xc8] sm:$0xff]  ;;  %v1895_v16 = vld [vmem:[#allocation8 + $0x90] sm:$0xff]  ;;  %v1904_v19 = vld [vmem:[#allocation8 + $0x78] sm:$0xff] }
  0x51   :  { %1362 = vmatprep.subr.bf16.mxu1 %v1492_v9  ;;  %v1312_v2 = vpack.c.bf16 %v194_v0, %v191_v1  ;;  %vm1858_vm10 = vmpackc.low %vm185_vm9, %vm1701_vm3  ;;  %593 = vmatprep.subr.mxu0 %v1870_v6  ;;  %v1879_v9 = vld [vmem:[#allocation8 + $0xc0] sm:$0xff]  ;;  %v1907_v20 = vld [vmem:[#allocation8 + $0x70] sm:$0xff] }
  0x52   :  { %v2247_v3 = vsel %vm1858_vm10, 4294967295, %v2246_v3  ;;  %594 = vmatpush1.msra.mxu0 %v1873_v7  ;;  %v1910_v21 = vld [vmem:[#allocation8 + $0x68] sm:$0xff]  ;;  %v1913_v22 = vld [vmem:[#allocation8 + $0x60] sm:$0xff]  ;;  %v1916_v23 = vld [vmem:[#allocation8 + $0x58] sm:$0xff] }
  0x53   :  { %2248 = vst [vmem:[#allocation23_spill] sm:$0xff] %v2247_v3  ;;  %595 = vmatprep.subr.mxu0 %v1876_v8  ;;  %v1925_v26 = vld [vmem:[#allocation8 + $0x40] sm:$0xff]  ;;  %v1928_v27 = vld [vmem:[#allocation8 + $0x38] sm:$0xff]  ;;  %v1931_v28 = vld [vmem:[#allocation8 + $0x30] sm:$0xff] }
  0x54   :  { %1363 = vmatpush3.bf16.msra.mxu1 %v1493_v11  ;;  %596 = vmatpush1.msra.mxu0 %v1879_v9  ;;  %v1882_v11 = vld [vmem:[#allocation8 + $0xb8] sm:$0xff]  ;;  %v1934_v29 = vld [vmem:[#allocation8 + $0x28] sm:$0xff]  ;;  %v1937_v30 = vld [vmem:[#allocation8 + $0x20] sm:$0xff] }
  0x55   :  { %1364 = vmatprep.subr.bf16.mxu1 %v1494_v12  ;;  %597 = vmatprep.subr.mxu0 %v1882_v11  ;;  %v1885_v12 = vld [vmem:[#allocation8 + $0xb0] sm:$0xff]  ;;  %v1946_v33 = vld [vmem:[#allocation8 + $0x8] sm:$0xff]  ;;  %v1949_v35 = vld [vmem:[#allocation8] sm:$0xff] }
  0x56   :  { %598 = vmatpush1.msra.mxu0 %v1885_v12  ;;  %v1943_v32 = vld [vmem:[#allocation8 + $0x10] sm:$0xff]  ;;  %v1952_v36 = vld [vmem:[#allocation8 + $0x1f8] sm:$0xff]  ;;  %v1960_v39 = vld [vmem:[#allocation8 + $0x1e8] sm:$0xff] }
  0x57   :  { %599 = vmatprep.subr.mxu0 %v1888_v13  ;;  %v1955_v38 = vld [vmem:[#allocation8 + $0x1f0] sm:$0xff]  ;;  %v1966_v41 = vld [vmem:[#allocation8 + $0x1d8] sm:$0xff]  ;;  %v1984_v50 = vld [vmem:[#allocation8 + $0x1a8] sm:$0xff] }
  0x58   :  { %1365 = vmatpush3.bf16.msra.mxu1 %v1495_v17  ;;  %600 = vmatpush1.msra.mxu0 %v1890_v14  ;;  %v1898_v17 = vld [vmem:[#allocation8 + $0x88] sm:$0xff]  ;;  %v1969_v42 = vld [vmem:[#allocation8 + $0x1d0] sm:$0xff]  ;;  %2249 = vst [vmem:[#allocation24_spill] sm:$0xff] %v1984_v50  ;;  %v1987_v51 = vld [vmem:[#allocation8 + $0x1a0] sm:$0xff] }
  0x59   :  { %1366 = vmatprep.subr.bf16.mxu1 %v1496_v18  ;;  %601 = vmatprep.subr.mxu0 %v1892_v15  ;;  %v1901_v18 = vld [vmem:[#allocation8 + $0x80] sm:$0xff]  ;;  %2250 = vst [vmem:[#allocation25_spill] sm:$0xff] %v1987_v51  ;;  %v1990_v52 = vld [vmem:[#allocation8 + $0x198] sm:$0xff]  ;;  %v1993_v53 = vld [vmem:[#allocation8 + $0x190] sm:$0xff] }
  0x5a   :  { %602 = vmatpush1.msra.mxu0 %v1895_v16  ;;  %2251 = vst [vmem:[#allocation26_spill] sm:$0xff] %v1990_v52  ;;  %2252 = vst [vmem:[#allocation27_spill] sm:$0xff] %v1993_v53  ;;  %v2012_v60 = vld [vmem:[#allocation8 + $0x158] sm:$0xff]  ;;  %v2015_v61 = vld [vmem:[#allocation8 + $0x150] sm:$0xff] }
  0x5b   :  { %603 = vmatprep.subr.mxu0 %v1898_v17  ;;  %2259 = vst [vmem:[#allocation34_spill] sm:$0xff] %v2012_v60  ;;  %2260 = vst [vmem:[#allocation35_spill] sm:$0xff] %v2015_v61  ;;  %v2021_v63 = vld [vmem:[#allocation8 + $0x140] sm:$0xff]  ;;  %v2024_v0 = vld [vmem:[#allocation8 + $0x138] sm:$0xff] }
  0x5c   :  { %1367 = vmatpush3.bf16.msra.mxu1 %v1497_v24  ;;  %604 = vmatpush1.msra.mxu0 %v1901_v18  ;;  %v1919_v24 = vld [vmem:[#allocation8 + $0x50] sm:$0xff]  ;;  %2262 = vst [vmem:[#allocation37_spill] sm:$0xff] %v2021_v63  ;;  %2263 = vst [vmem:[#allocation38_spill] sm:$0xff] %v2024_v0  ;;  %v2033_v3 = vld [vmem:[#allocation8 + $0x120] sm:$0xff] }
  0x5d   :  { %1368 = vmatprep.subr.bf16.mxu1 %v1498_v25  ;;  %605 = vmatprep.subr.mxu0 %v1904_v19  ;;  %v1922_v25 = vld [vmem:[#allocation8 + $0x48] sm:$0xff]  ;;  %v2027_v1 = vld [vmem:[#allocation8 + $0x130] sm:$0xff]  ;;  %2266 = vst [vmem:[#allocation41_spill] sm:$0xff] %v2033_v3  ;;  %v2036_v48 = vld [vmem:[#allocation8 + $0x118] sm:$0xff] }
  0x5e   :  { %606 = vmatpush1.msra.mxu0 %v1907_v20  ;;  %2264 = vst [vmem:[#allocation39_spill] sm:$0xff] %v2027_v1  ;;  %2267 = vst [vmem:[#allocation42_spill] sm:$0xff] %v2036_v48  ;;  %v2039_v47 = vld [vmem:[#allocation8 + $0x110] sm:$0xff]  ;;  %v2042_v34 = vld [vmem:[#allocation8 + $0x108] sm:$0xff] }
  0x5f   :  { %607 = vmatprep.subr.mxu0 %v1910_v21  ;;  %2268 = vst [vmem:[#allocation43_spill] sm:$0xff] %v2039_v47  ;;  %2269 = vst [vmem:[#allocation44_spill] sm:$0xff] %v2042_v34  ;;  %v2045_v10 = vld [vmem:[#allocation8 + $0x100] sm:$0xff] }
  0x60   :  { %1369 = vmatpush3.bf16.msra.mxu1 %v1499_v31  ;;  %608 = vmatpush1.msra.mxu0 %v1913_v22  ;;  %v1940_v31 = vld [vmem:[#allocation8 + $0x18] sm:$0xff]  ;;  %2270 = vst [vmem:[#allocation45_spill] sm:$0xff] %v2045_v10 }
  0x61   :  { %1430 = vmatprep.subr.bf16.mxu1 %v1500_v40  ;;  %609 = vmatprep.subr.mxu0 %v1916_v23 }
  0x62   :  { %610 = vmatpush1.msra.mxu0 %v1919_v24 }
  0x63   :  { %1304 = vmatmul.mubr.msk.bf16.vlgmr.msra.gmra.mxu1 %vm1800_vm4, %v1303_v44  ;;  %611 = vmatprep.subr.mxu0 %v1922_v25  ;;  %v1972_v44 = vld [vmem:[#allocation8 + $0x1c8] sm:$0xff] }
  0x64   :  { %1431 = vmatpush3.bf16.msra.mxu1 %v1500_v40  ;;  %445 = vmatprep.mubr.bf16.mxu1 %v211_v46  ;;  %v1963_v40 = vld [vmem:[#allocation8 + $0x1e0] sm:$0xff]  ;;  %v1978_v46 = vld [vmem:[#allocation8 + $0x1b8] sm:$0xff] }
  0x65   :  { %1432 = vmatprep.subr.bf16.mxu1 %v1501_v45  ;;  %612 = vmatpush1.msra.mxu0 %v1925_v26 }
  0x66   :  { %613 = vmatprep.subr.mxu0 %v1928_v27 }
  0x67   :  { %614 = vmatpush1.msra.mxu0 %v1931_v28 }
  0x68   :  { %1433 = vmatpush3.bf16.msra.mxu1 %v1501_v45  ;;  %615 = vmatprep.subr.mxu0 %v1934_v29  ;;  %v1975_v45 = vld [vmem:[#allocation8 + $0x1c0] sm:$0xff] }
  0x69   :  { %1434 = vmatprep.subr.bf16.mxu1 %v1502_v49  ;;  %616 = vmatpush1.msra.mxu0 %v1937_v30 }
  0x6a   :  { %617 = vmatprep.subr.mxu0 %v1940_v31 }
  0x6b   :  { %1307 = vmatmul.mubr.msk.bf16.gmra.mxu1 %vm1826_vm7, %v1306_v55  ;;  %618 = vmatpush1.msra.mxu0 %v1943_v32  ;;  %v1999_v55 = vld [vmem:[#allocation8 + $0x180] sm:$0xff] }
  0x6c   :  { %1435 = vmatpush3.bf16.msra.mxu1 %v1502_v49  ;;  %1446 = vmatprep.mubr.msk.bf16.mxu1 %vm1833_vm8, %v1309_v56  ;;  %v1981_v49 = vld [vmem:[#allocation8 + $0x1b0] sm:$0xff]  ;;  %2254 = vst [vmem:[#allocation29_spill] sm:$0xff] %v1999_v55  ;;  %v2002_v56 = vld [vmem:[#allocation8 + $0x178] sm:$0xff] }
  0x6d   :  { %1436 = vmatprep.subr.bf16.mxu1 %v1503_v54  ;;  %619 = vmatprep.subr.mxu0 %v1946_v33  ;;  %2255 = vst [vmem:[#allocation30_spill] sm:$0xff] %v2002_v56 }
  0x6e   :  { %620 = vmatpush1.msra.mxu0 %v1949_v35 }
  0x6f   :  { %621 = vmatprep.subr.mxu0 %v1952_v36 }
  0x70   :  { %1437 = vmatpush3.bf16.msra.mxu1 %v1503_v54  ;;  %622 = vmatpush2.msra.mxu0 %v1955_v38  ;;  %v1996_v54 = vld [vmem:[#allocation8 + $0x188] sm:$0xff] }
  0x71   :  { %1438 = vmatprep.subr.bf16.mxu1 %v1504_v57  ;;  %623 = vmatprep.subr.mxu0 %v1960_v39  ;;  %2253 = vst [vmem:[#allocation28_spill] sm:$0xff] %v1996_v54 }
  0x72   :  { %624 = vmatpush2.msra.mxu0 %v1963_v40 }
  0x73   :  { %625 = vmatprep.subr.mxu0 %v1966_v41 }
  0x74   :  { %1439 = vmatpush3.bf16.msra.mxu1 %v1504_v57  ;;  %626 = vmatpush2.msra.mxu0 %v1969_v42  ;;  %v2004_v57 = vld [vmem:[#allocation8 + $0x170] sm:$0xff] }
  0x75   :  { %1440 = vmatprep.subr.bf16.mxu1 %v1505_v58  ;;  %627 = vmatprep.subr.mxu0 %v1972_v44  ;;  %2256 = vst [vmem:[#allocation31_spill] sm:$0xff] %v2004_v57 }
  0x76   :  { %628 = vmatpush2.msra.mxu0 %v1975_v45 }
  0x77   :  { %629 = vmatprep.subr.mxu0 %v1978_v46 }
  0x78   :  { %1441 = vmatpush3.bf16.msra.mxu1 %v1505_v58  ;;  %630 = vmatpush2.msra.mxu0 %v1981_v49  ;;  %v2006_v58 = vld [vmem:[#allocation8 + $0x168] sm:$0xff] }
  0x79   :  { %1442 = vmatprep.subr.bf16.mxu1 %v1506_v59  ;;  %631 = vmatprep.subr.mxu0 %v1984_v50  ;;  %2257 = vst [vmem:[#allocation32_spill] sm:$0xff] %v2006_v58 }
  0x7a   :  { %632 = vmatpush2.msra.mxu0 %v1987_v51 }
  0x7b   :  { %633 = vmatprep.subr.mxu0 %v1990_v52 }
  0x7c   :  { %1443 = vmatpush3.bf16.msra.mxu1 %v1506_v59  ;;  %634 = vmatpush2.msra.mxu0 %v1993_v53  ;;  %v2009_v59 = vld [vmem:[#allocation8 + $0x160] sm:$0xff] }
  0x7d   :  { %1444 = vmatprep.subr.bf16.mxu1 %v1507_v62  ;;  %635 = vmatprep.subr.mxu0 %v1996_v54  ;;  %2258 = vst [vmem:[#allocation33_spill] sm:$0xff] %v2009_v59 }
  0x7e   :  { %636 = vmatpush2.msra.mxu0 %v1999_v55 }
  0x7f   :  { %637 = vmatprep.subr.mxu0 %v2002_v56 }
  0x80   :  { %1445 = vmatpush3.bf16.msra.mxu1 %v1507_v62  ;;  %638 = vmatpush2.msra.mxu0 %v2004_v57  ;;  %v2018_v62 = vld [vmem:[#allocation8 + $0x148] sm:$0xff] }
  0x81   :  { %639 = vmatprep.subr.mxu0 %v2006_v58  ;;  %2261 = vst [vmem:[#allocation36_spill] sm:$0xff] %v2018_v62 }
  0x82   :  { %640 = vmatpush2.msra.mxu0 %v2009_v59 }
  0x83   :  { %1447 = vmatmul.mubr.msk.bf16.vlgmr.msra.gmra.mxu1 %vm1858_vm10, %v1312_v2  ;;  %641 = vmatprep.subr.mxu0 %v2012_v60  ;;  %v2030_v2 = vld [vmem:[#allocation8 + $0x128] sm:$0xff] }
  0x84   :  { %642 = vmatpush2.msra.mxu0 %v2015_v61  ;;  %2265 = vst [vmem:[#allocation40_spill] sm:$0xff] %v2030_v2 }
  0x85   :  { %643 = vmatprep.subr.mxu0 %v2018_v62 }
  0x86   :  { %644 = vmatpush2.msra.mxu0 %v2021_v63 }
  0x87   :  { %645 = vmatprep.subr.mxu0 %v2024_v0 }
  0x88   :  { %646 = vmatpush2.msra.mxu0 %v2027_v1 }
  0x89   :  { %647 = vmatprep.subr.mxu0 %v2030_v2 }
  0x8a   :  { %648 = vmatpush2.msra.mxu0 %v2033_v3 }
  0x8b   :  { %649 = vmatprep.subr.mxu0 %v2036_v48 }
  0x8c   :  { %650 = vmatpush2.msra.mxu0 %v2039_v47 }
  0x8d   :  { %651 = vmatprep.subr.mxu0 %v2042_v34 }
  0x8e   :  { %652 = vmatpush2.msra.mxu0 %v2045_v10 }
  0x8f   :  { %1117 = vmatprep.subr.mxu0 %v1812_v37 }
 0x123   :  { %v1370_v1 = vpop.f32.mrf.mxu1 }
 0x125   :  { %v1371_v2 = vpop.f32.mrf.mxu1 }
 0x126   :  { %v1372_v58 = vadd.f32 %v1371_v2, %v1370_v1 }
 0x127   :  { %v1373_v0 = vpop.f32.mrf.mxu1 }
 0x129   :  { %v1374_v63 = vpop.f32.mrf.mxu1 }
 0x12a   :  { %v1375_v56 = vadd.f32 %v1374_v63, %v1373_v0 }
 0x12b   :  { %v1376_v62 = vpop.f32.mrf.mxu1 }
 0x12d   :  { %v1377_v3 = vpop.f32.mrf.mxu1 }
 0x12e   :  { %v1378_v47 = vadd.f32 %v1377_v3, %v1376_v62 }
 0x12f   :  { %v1379_v61 = vpop.f32.mrf.mxu1 }
 0x131   :  { %v1380_v60 = vpop.f32.mrf.mxu1 }
 0x132   :  { %v1381_v10 = vadd.f32 %v1380_v60, %v1379_v61 }
 0x143   :  { %v1448_v59 = vpop.f32.mrf.mxu1 }
 0x144   :  { %v2053_v54 = vadd.f32 %v1448_v59, %v1378_v47 }
 0x145   :  { %v488_v48 = vpop.f32.mrf.mxu1 }
 0x146   :  { %v2051_v55 = vadd.f32 %v1372_v58, %v488_v48  ;;  %v514_v48 = vmul.f32 %v2053_v54, %v2053_v54 }
 0x147   :  { %v1449_v57 = vpop.f32.mrf.mxu1 }
 0x148   :  { %2271 = vst [vmem:[#allocation46_spill] sm:$0xff] %v2051_v55  ;;  %v512_v53 = vmul.f32 %v2051_v55, %v2051_v55  ;;  %v2059_v52 = vadd.f32 %v1449_v57, %v1381_v10 }
 0x149   :  { %v491_v34 = vpop.f32.mrf.mxu1 }
 0x14a   :  { %v2055_v37 = vadd.f32 %v1375_v56, %v491_v34  ;;  %v515_v34 = vmul.f32 %v2059_v52, %v2059_v52 }
 0x14c   :  { %2272 = vst [vmem:[#allocation47_spill] sm:$0xff] %v2055_v37  ;;  %v503_v51 = vadd.f32 %v2055_v37, %v2051_v55  ;;  %v513_v63 = vmul.f32 %v2055_v37, %v2055_v37 }
 0x14e   :  { %v504_v3 = vadd.f32 %v503_v51, %v2053_v54  ;;  %v516_v47 = vadd.f32 %v513_v63, %v512_v53  ;;  %v2295_v63 = vld [vmem:[#allocation19_spill] sm:$0xff] }
 0x150   :  { %v505_v56 = vadd.f32 %v504_v3, %v2059_v52  ;;  %v517_v58 = vadd.f32 %v516_v47, %v514_v48  ;;  %v2135_v48 = vsub.s32 0, %v2295_v63 }
 0x152   :  { %v518_v10 = vadd.f32 %v517_v58, %v515_v34  ;;  %v506_v57 = vrot.slane %v505_v56, 4  ;;  %v2296_v34 = vld [vmem:[#allocation46_spill] sm:$0xff] }
 0x153   :  { %v2297_v58 = vld [vmem:[#allocation47_spill] sm:$0xff] }
 0x154   :  { %v519_v59 = vrot.slane %v518_v10, 4  ;;  %v507_v60 = vadd.f32 %v506_v57, %v505_v56 }
 0x156   :  { %v520_v61 = vadd.f32 %v519_v59, %v518_v10  ;;  %v508_v62 = vrot.slane %v507_v60, 2 }
 0x158   :  { %v521_v0 = vrot.slane %v520_v61, 2  ;;  %v509_v1 = vadd.f32 %v508_v62, %v507_v60 }
 0x15a   :  { %v522_v2 = vadd.f32 %v521_v0, %v520_v61  ;;  %v510_v37 = vrot.slane %v509_v1, 1  ;;  %v1314_v61 = vld [vmem:[%s2194_s4] ss:$0 sm:$0xff]  ;;  %s1702_s4 = smov [#allocation11]  }
 0x15b   :  { %s1248_s12 = sshll.u32 %s1702_s4, 4  ;;  %s1249_s12 = int_to_ptr.vmem [resolvable:$true] %s1248_s12 }
 0x15c   :  { %v523_v55 = vrot.slane %v522_v2, 1  ;;  %v511_v51 = vadd.f32 %v510_v37, %v509_v1  ;;  %s1640_s13 = scalar_lea.vmem %s1249_s12, 512  ;;  %p1645_p12 = scmp.lt.s32.totalorder %s1249_s12, %s1249_s12 }
 0x15d   :  { %p1641_p11 = scmp.ne.s32.totalorder %s1249_s12, %s1640_s13  ;;  %p1646_p13 = scmp.lt.s32.totalorder %s1640_s13, %s1640_s13 }
 0x15e   :  { %v524_v50 = vadd.f32 %v523_v55, %v522_v2 }
 0x15f   :  { %p1647_p0 = por %p1646_p13, %p1645_p12 }
 0x160   :  { %653 = vmatprep.mubr.f32.mxu0 %v524_v50 }
 0x161   :  { %654 = vmatmul.mubr.f32.vlgmr.msra.gmra.mxu0 %v511_v51  ;;  %v1315_v51 = vld [vmem:[#allocation10] ss:$0 sm:$0xff]  ;;  %p1648_p1 = pnand %p1647_p0, %p1641_p11 }
 0x162   :  { %1118 = vmatpush1.msra.mxu0 %v1819_v43  ;;  %v2273_v43 = vld [vmem:[#allocation24_spill] sm:$0xff] }
 0x163   :  { %1119 = vmatprep.subr.mxu0 %v1864_v4  ;;  %v2274_v4 = vld [vmem:[#allocation25_spill] sm:$0xff] }
 0x164   :  { %1120 = vmatpush1.msra.mxu0 %v1867_v5  ;;  %v2275_v5 = vld [vmem:[#allocation26_spill] sm:$0xff] }
 0x165   :  { %1121 = vmatprep.subr.mxu0 %v1870_v6  ;;  %v2276_v6 = vld [vmem:[#allocation27_spill] sm:$0xff] }
 0x166   :  { %1122 = vmatpush1.msra.mxu0 %v1873_v7  ;;  %v2277_v7 = vld [vmem:[#allocation28_spill] sm:$0xff] }
 0x167   :  { %1123 = vmatprep.subr.mxu0 %v1876_v8  ;;  %v2278_v8 = vld [vmem:[#allocation29_spill] sm:$0xff] }
 0x168   :  { %1124 = vmatpush1.msra.mxu0 %v1879_v9  ;;  %v2279_v9 = vld [vmem:[#allocation30_spill] sm:$0xff] }
 0x169   :  { %1125 = vmatprep.subr.mxu0 %v1882_v11  ;;  %v2280_v11 = vld [vmem:[#allocation31_spill] sm:$0xff] }
 0x16a   :  { %1126 = vmatpush1.msra.mxu0 %v1885_v12  ;;  %v2281_v12 = vld [vmem:[#allocation32_spill] sm:$0xff] }
 0x16b   :  { %1127 = vmatprep.subr.mxu0 %v1888_v13  ;;  %v2282_v13 = vld [vmem:[#allocation33_spill] sm:$0xff] }
 0x16c   :  { %1128 = vmatpush1.msra.mxu0 %v1890_v14  ;;  %v2283_v14 = vld [vmem:[#allocation34_spill] sm:$0xff] }
 0x16d   :  { %1129 = vmatprep.subr.mxu0 %v1892_v15  ;;  %v2284_v15 = vld [vmem:[#allocation35_spill] sm:$0xff] }
 0x16e   :  { %1130 = vmatpush1.msra.mxu0 %v1895_v16  ;;  %v2285_v16 = vld [vmem:[#allocation36_spill] sm:$0xff] }
 0x16f   :  { %1131 = vmatprep.subr.mxu0 %v1898_v17  ;;  %v2286_v17 = vld [vmem:[#allocation37_spill] sm:$0xff] }
 0x170   :  { %1132 = vmatpush1.msra.mxu0 %v1901_v18  ;;  %v2287_v18 = vld [vmem:[#allocation38_spill] sm:$0xff] }
 0x171   :  { %1133 = vmatprep.subr.mxu0 %v1904_v19  ;;  %v2288_v19 = vld [vmem:[#allocation39_spill] sm:$0xff] }
 0x172   :  { %1134 = vmatpush1.msra.mxu0 %v1907_v20  ;;  %v2289_v20 = vld [vmem:[#allocation40_spill] sm:$0xff] }
 0x173   :  { %1135 = vmatprep.subr.mxu0 %v1910_v21  ;;  %v2290_v21 = vld [vmem:[#allocation41_spill] sm:$0xff] }
 0x174   :  { %1136 = vmatpush1.msra.mxu0 %v1913_v22  ;;  %v2291_v22 = vld [vmem:[#allocation42_spill] sm:$0xff] }
 0x175   :  { %1137 = vmatprep.subr.mxu0 %v1916_v23  ;;  %v2292_v23 = vld [vmem:[#allocation43_spill] sm:$0xff] }
 0x176   :  { %1138 = vmatpush1.msra.mxu0 %v1919_v24  ;;  %v2293_v24 = vld [vmem:[#allocation44_spill] sm:$0xff] }
 0x177   :  { %1139 = vmatprep.subr.mxu0 %v1922_v25  ;;  %v2294_v25 = vld [vmem:[#allocation45_spill] sm:$0xff] }
 0x178   :  { %1140 = vmatpush1.msra.mxu0 %v1925_v26  ;;  %v1508_v26 = vld [vmem:[#allocation7 + $0x78] sm:$0xff]  }
 0x179   :  { %1141 = vmatprep.subr.mxu0 %v1928_v27  ;;  %v1509_v27 = vld [vmem:[#allocation7 + $0x38] sm:$0xff]   ;;  %1392 = vmatprep.subr.bf16.mxu1 %v1508_v26 }
 0x17a   :  { %1142 = vmatpush1.msra.mxu0 %v1931_v28  ;;  %1393 = vmatpush3.bf16.msra.mxu1 %v1509_v27  ;;  %v1510_v28 = vld [vmem:[#allocation7 + $0x70] sm:$0xff]  }
 0x17b   :  { %1143 = vmatprep.subr.mxu0 %v1934_v29  ;;  %v1511_v29 = vld [vmem:[#allocation7 + $0x30] sm:$0xff]   ;;  %1394 = vmatprep.subr.bf16.mxu1 %v1510_v28  ;;  %v1526_v28 = vld [vmem:[#allocation7 + $0xa8] sm:$0xff]  }
 0x17c   :  { %1144 = vmatpush1.msra.mxu0 %v1937_v30  ;;  %v1512_v30 = vld [vmem:[#allocation7 + $0x68] sm:$0xff]  }
 0x17d   :  { %1145 = vmatprep.subr.mxu0 %v1940_v31  ;;  %v1513_v31 = vld [vmem:[#allocation7 + $0x28] sm:$0xff]  }
 0x17e   :  { %1146 = vmatpush1.msra.mxu0 %v1943_v32  ;;  %1395 = vmatpush3.bf16.msra.mxu1 %v1511_v29  ;;  %v1514_v32 = vld [vmem:[#allocation7 + $0x60] sm:$0xff]  }
 0x17f   :  { %1147 = vmatprep.subr.mxu0 %v1946_v33  ;;  %1396 = vmatprep.subr.bf16.mxu1 %v1512_v30  ;;  %v1515_v33 = vld [vmem:[#allocation7 + $0x20] sm:$0xff]  }
 0x180   :  { %1148 = vmatpush1.msra.mxu0 %v1949_v35  ;;  %v1516_v35 = vld [vmem:[#allocation7 + $0x58] sm:$0xff]  }
 0x181   :  { %1149 = vmatprep.subr.mxu0 %v1952_v36  ;;  %v1517_v36 = vld [vmem:[#allocation7 + $0x18] sm:$0xff]  }
 0x182   :  { %1150 = vmatpush2.msra.mxu0 %v1955_v38  ;;  %1397 = vmatpush3.bf16.msra.mxu1 %v1513_v31  ;;  %v1518_v38 = vld [vmem:[#allocation7 + $0x50] sm:$0xff]  }
 0x183   :  { %1151 = vmatprep.subr.mxu0 %v1960_v39  ;;  %1398 = vmatprep.subr.bf16.mxu1 %v1514_v32  ;;  %v1519_v39 = vld [vmem:[#allocation7 + $0x10] sm:$0xff]  }
 0x184   :  { %1152 = vmatpush2.msra.mxu0 %v1963_v40  ;;  %v1520_v40 = vld [vmem:[#allocation7 + $0x48] sm:$0xff]  }
 0x185   :  { %1153 = vmatprep.subr.mxu0 %v1966_v41  ;;  %v1521_v41 = vld [vmem:[#allocation7 + $0x8] sm:$0xff]  }
 0x186   :  { %1154 = vmatpush2.msra.mxu0 %v1969_v42  ;;  %1399 = vmatpush3.bf16.msra.mxu1 %v1515_v33  ;;  %v1522_v42 = vld [vmem:[#allocation7 + $0x40] sm:$0xff]  }
 0x187   :  { %1155 = vmatprep.subr.mxu0 %v1972_v44  ;;  %1400 = vmatprep.subr.bf16.mxu1 %v1516_v35  ;;  %v1523_v44 = vld [vmem:[#allocation7] sm:$0xff]  }
 0x188   :  { %1156 = vmatpush2.msra.mxu0 %v1975_v45  ;;  %v1524_v45 = vld [vmem:[#allocation7 + $0xb8] sm:$0xff]   ;;  %v1527_v35 = vld [vmem:[#allocation7 + $0xa0] sm:$0xff]  }
 0x189   :  { %1157 = vmatprep.subr.mxu0 %v1978_v46 }
 0x18a   :  { %1158 = vmatpush2.msra.mxu0 %v1981_v49  ;;  %1401 = vmatpush3.bf16.msra.mxu1 %v1517_v36 }
 0x18b   :  { %1159 = vmatprep.subr.mxu0 %v2273_v43  ;;  %1402 = vmatprep.subr.bf16.mxu1 %v1518_v38 }
 0x18c   :  { %1160 = vmatpush2.msra.mxu0 %v2274_v4 }
 0x18d   :  { %1161 = vmatprep.subr.mxu0 %v2275_v5 }
 0x18e   :  { %1162 = vmatpush2.msra.mxu0 %v2276_v6  ;;  %1403 = vmatpush3.bf16.msra.mxu1 %v1519_v39 }
 0x18f   :  { %1163 = vmatprep.subr.mxu0 %v2277_v7  ;;  %1404 = vmatprep.subr.bf16.mxu1 %v1520_v40  ;;  %v1528_v40 = vld [vmem:[#allocation7 + $0x98] sm:$0xff]  }
 0x190   :  { %1164 = vmatpush2.msra.mxu0 %v2278_v8 }
 0x191   :  { %1165 = vmatprep.subr.mxu0 %v2279_v9 }
 0x192   :  { %1166 = vmatpush2.msra.mxu0 %v2280_v11  ;;  %1405 = vmatpush3.bf16.msra.mxu1 %v1521_v41  ;;  %v1529_v41 = vld [vmem:[#allocation7 + $0x90] sm:$0xff]  }
 0x193   :  { %1167 = vmatprep.subr.mxu0 %v2281_v12  ;;  %1406 = vmatprep.subr.bf16.mxu1 %v1522_v42  ;;  %v1530_v42 = vld [vmem:[#allocation7 + $0x88] sm:$0xff]  }
 0x194   :  { %1168 = vmatpush2.msra.mxu0 %v2282_v13 }
 0x195   :  { %1169 = vmatprep.subr.mxu0 %v2283_v14 }
 0x196   :  { %1170 = vmatpush2.msra.mxu0 %v2284_v15  ;;  %1407 = vmatpush3.bf16.msra.mxu1 %v1523_v44  ;;  %v1531_v44 = vld [vmem:[#allocation7 + $0x80] sm:$0xff]  }
 0x197   :  { %1171 = vmatprep.subr.mxu0 %v2285_v16  ;;  %1450 = vmatprep.subr.bf16.mxu1 %v1524_v45 }
 0x198   :  { %1172 = vmatpush2.msra.mxu0 %v2286_v17 }
 0x199   :  { %1173 = vmatprep.subr.mxu0 %v2287_v18 }
 0x19a   :  { %1174 = vmatpush2.msra.mxu0 %v2288_v19 }
 0x19b   :  { %1175 = vmatprep.subr.mxu0 %v2289_v20 }
 0x19c   :  { %1176 = vmatpush2.msra.mxu0 %v2290_v21  ;;  %v1525_v21 = vld [vmem:[#allocation7 + $0xb0] sm:$0xff]  }
 0x19d   :  { %1177 = vmatprep.subr.mxu0 %v2291_v22 }
 0x19e   :  { %1178 = vmatpush2.msra.mxu0 %v2292_v23 }
 0x19f   :  { %1179 = vmatprep.subr.mxu0 %v2293_v24 }
 0x1a0   :  { %1180 = vmatpush2.msra.mxu0 %v2294_v25 }
 0x221   :  { %v655_v46 = vpop.f32.mrf.mxu0 }
 0x222   :  { %v660_v49 = vmul.f32 %v655_v46, %v655_v46  ;;  %v666_v3 = vrot.slane %v655_v46, %v2135_v48 }
 0x223   :  { %v657_v50 = vpop.f32.mrf.mxu0 }
 0x224   :  { %v661_v53 = vsub.f32 %v657_v50, %v660_v49  ;;  %v667_v56 = vsub.f32 %v2296_v34, %v666_v3  ;;  %v668_v10 = vsub.f32 %v2297_v58, %v666_v3  ;;  %v669_v57 = vsub.f32 %v2053_v54, %v666_v3 }
 0x225   :  { %v670_v59 = vsub.f32 %v2059_v52, %v666_v3 }
 0x226   :  { %v662_v55 = vmax.f32 %v661_v53, 0.0 }
 0x228   :  { %v671_v37 = vadd.f32 1e-05, %v662_v55 }
 0x22a   :  { %1532 = vrsqrt.f32 %v671_v37 }
 0x237   :  { %v1533_v47 = vpop.eup %1532 }
 0x238   :  { %v676_v60 = vrot.slane %v1533_v47, %v2135_v48 }
 0x23a   :  { %v680_v62 = vmul.f32 %v676_v60, %v670_v59  ;;  %v677_v0 = vmul.f32 %v676_v60, %v667_v56  ;;  %v678_v1 = vmul.f32 %v676_v60, %v668_v10  ;;  %v679_v2 = vmul.f32 %v676_v60, %v669_v57 }
 0x23c   :  { %v688_v43 = vmul.f32 %v1314_v61, %v677_v0  ;;  %v689_v4 = vmul.f32 %v1314_v61, %v678_v1  ;;  %v691_v5 = vmul.f32 %v1314_v61, %v680_v62  ;;  %v690_v6 = vmul.f32 %v1314_v61, %v679_v2 }
 0x23e   :  { %v699_v7 = vadd.f32 %v1315_v51, %v688_v43  ;;  %v700_v8 = vadd.f32 %v1315_v51, %v689_v4  ;;  %v702_v54 = vadd.f32 %v1315_v51, %v691_v5  ;;  %v701_v9 = vadd.f32 %v1315_v51, %v690_v6 }
 0x240   :  { %v703_v52 = vmax.f32 %v699_v7, 0.0  ;;  %v704_v11 = vmax.f32 %v700_v8, 0.0  ;;  %v706_v12 = vmax.f32 %v702_v54, 0.0  ;;  %v705_v13 = vmax.f32 %v701_v9, 0.0 }
 0x242   :  { %v736_v14 = vpack.c.bf16 %v704_v11, %v703_v52  ;;  %707 = vst [vmem:[#allocation11] sm:$0xff] %v703_v52  ;;  %708 = vst [vmem:[#allocation11 + $0x8] sm:$0xff] %v704_v11  ;;  %v711_v15 = vrot.slane %v703_v52, 7  ;;  %v712_v16 = vrot.slane %v704_v11, 7  ;;  %v714_v17 = vrot.slane %v706_v12, 7 }
 0x243   :  { %710 = vst [vmem:[#allocation11 + $0x18] sm:$0xff] %v706_v12  ;;  %709 = vst [vmem:[#allocation11 + $0x10] sm:$0xff] %v705_v13  ;;  %v739_v22 = vpack.c.bf16 %v706_v12, %v705_v13  ;;  %v713_v23 = vrot.slane %v705_v13, 7  ;;  %v723_v25 = vrot.slane %v703_v52, 1  ;;  %v724_v26 = vrot.slane %v704_v11, 1 }
 0x244   :  { %965 = vmatprep.mubr.bf16.mxu1 %v736_v14  ;;  %v717_v18 = vsel %vm165_vm1, %v711_v15, %v712_v16  ;;  %v718_v19 = vsel %vm165_vm1, %v714_v17, %v711_v15  ;;  %v725_v27 = vrot.slane %v705_v13, 1 }
 0x245   :  { %v1341_v20 = vpack.c.bf16 %v717_v18, %v718_v19  ;;  %v715_v29 = vsel %vm165_vm1, %v713_v23, %v714_v17  ;;  %v716_v30 = vsel %vm165_vm1, %v712_v16, %v713_v23  ;;  %v729_v32 = vsel %vm190_vm2, %v723_v25, %v724_v26 }
 0x246   :  { %v728_v31 = vsel %vm190_vm2, %v724_v26, %v725_v27  ;;  %v1344_v33 = vpack.c.bf16 %v715_v29, %v716_v30 }
 0x247   :  { %1342 = vmatmul.mubr.msk.bf16.vlgmr.msra.gmra.mxu1 %vm1800_vm4, %v1341_v20  ;;  %v1347_v36 = vpack.c.bf16 %v728_v31, %v729_v32 }
 0x248   :  { %1451 = vmatpush3.bf16.msra.mxu1 %v1524_v45  ;;  %973 = vmatprep.mubr.bf16.mxu1 %v739_v22  ;;  %v726_v45 = vrot.slane %v706_v12, 1 }
 0x249   :  { %1452 = vmatprep.subr.bf16.mxu1 %v1525_v21 }
 0x24a   :  { %v727_v46 = vsel %vm190_vm2, %v725_v27, %v726_v45  ;;  %v730_v49 = vsel %vm190_vm2, %v726_v45, %v723_v25 }
 0x24b   :  { %v1350_v50 = vpack.c.bf16 %v730_v49, %v727_v46 }
 0x24c   :  { %1453 = vmatpush3.bf16.msra.mxu1 %v1525_v21 }
 0x24d   :  { %1454 = vmatprep.subr.bf16.mxu1 %v1526_v28 }
 0x24f   :  { %1345 = vmatmul.mubr.msk.bf16.gmra.mxu1 %vm1826_vm7, %v1344_v33 }
 0x250   :  { %1455 = vmatpush3.bf16.msra.mxu1 %v1526_v28  ;;  %1466 = vmatprep.mubr.msk.bf16.mxu1 %vm1833_vm8, %v1347_v36 }
 0x251   :  { %1456 = vmatprep.subr.bf16.mxu1 %v1527_v35 }
 0x254   :  { %1457 = vmatpush3.bf16.msra.mxu1 %v1527_v35 }
 0x255   :  { %1458 = vmatprep.subr.bf16.mxu1 %v1528_v40 }
 0x258   :  { %1459 = vmatpush3.bf16.msra.mxu1 %v1528_v40 }
 0x259   :  { %1460 = vmatprep.subr.bf16.mxu1 %v1529_v41 }
 0x25c   :  { %1461 = vmatpush3.bf16.msra.mxu1 %v1529_v41 }
 0x25d   :  { %1462 = vmatprep.subr.bf16.mxu1 %v1530_v42 }
 0x260   :  { %1463 = vmatpush3.bf16.msra.mxu1 %v1530_v42 }
 0x261   :  { %1464 = vmatprep.subr.bf16.mxu1 %v1531_v44 }
 0x264   :  { %1465 = vmatpush3.bf16.msra.mxu1 %v1531_v44 }
 0x267   :  { %1467 = vmatmul.mubr.msk.bf16.vlgmr.msra.gmra.mxu1 %vm1858_vm10, %v1350_v50 }
 0x307   :  { %v1408_v55 = vpop.f32.mrf.mxu1 }
 0x309   :  { %v1409_v37 = vpop.f32.mrf.mxu1 }
 0x30a   :  { %v1410_v60 = vadd.f32 %v1409_v37, %v1408_v55 }
 0x30b   :  { %v1411_v3 = vpop.f32.mrf.mxu1 }
 0x30d   :  { %v1412_v47 = vpop.f32.mrf.mxu1 }
 0x30e   :  { %v1413_v62 = vadd.f32 %v1412_v47, %v1411_v3 }
 0x30f   :  { %v1414_v34 = vpop.f32.mrf.mxu1 }
 0x311   :  { %v1415_v56 = vpop.f32.mrf.mxu1 }
 0x312   :  { %v1416_v63 = vadd.f32 %v1415_v56, %v1414_v34 }
 0x313   :  { %v1417_v58 = vpop.f32.mrf.mxu1 }
 0x315   :  { %v1418_v10 = vpop.f32.mrf.mxu1 }
 0x316   :  { %v1419_v2 = vadd.f32 %v1418_v10, %v1417_v58 }
 0x327   :  { %v1468_v57 = vpop.f32.mrf.mxu1 }
 0x328   :  { %v1025_v51 = vadd.f32 %v1468_v57, %v1416_v63 }
 0x329   :  { %v1016_v59 = vpop.f32.mrf.mxu1 }
 0x32a   :  { %v1017_v0 = vadd.f32 %v1410_v60, %v1016_v59  ;;  %v1042_v8 = vmul.f32 %v1025_v51, %v1025_v51 }
 0x32b   :  { %v1469_v61 = vpop.f32.mrf.mxu1 }
 0x32c   :  { %v1040_v4 = vmul.f32 %v1017_v0, %v1017_v0  ;;  %v1028_v5 = vadd.f32 %v1469_v61, %v1419_v2 }
 0x32d   :  { %v1019_v1 = vpop.f32.mrf.mxu1 }
 0x32e   :  { %v1020_v43 = vadd.f32 %v1413_v62, %v1019_v1  ;;  %v1043_v52 = vmul.f32 %v1028_v5, %v1028_v5 }
 0x330   :  { %v1031_v6 = vadd.f32 %v1020_v43, %v1017_v0  ;;  %v1041_v7 = vmul.f32 %v1020_v43, %v1020_v43 }
 0x332   :  { %v1032_v54 = vadd.f32 %v1031_v6, %v1025_v51  ;;  %v1044_v9 = vadd.f32 %v1041_v7, %v1040_v4 }
 0x334   :  { %v1033_v11 = vadd.f32 %v1032_v54, %v1028_v5  ;;  %v1045_v12 = vadd.f32 %v1044_v9, %v1042_v8 }
 0x336   :  { %v1034_v13 = vrot.slane %v1033_v11, 4  ;;  %v1046_v14 = vadd.f32 %v1045_v12, %v1043_v52 }
 0x338   :  { %v1035_v15 = vadd.f32 %v1034_v13, %v1033_v11  ;;  %v1047_v16 = vrot.slane %v1046_v14, 4 }
 0x33a   :  { %v1048_v17 = vadd.f32 %v1047_v16, %v1046_v14  ;;  %v1036_v18 = vrot.slane %v1035_v15, 2 }
 0x33c   :  { %v1049_v19 = vrot.slane %v1048_v17, 2  ;;  %v1037_v20 = vadd.f32 %v1036_v18, %v1035_v15 }
 0x33e   :  { %v1050_v21 = vadd.f32 %v1049_v19, %v1048_v17  ;;  %v1038_v22 = vrot.slane %v1037_v20, 1 }
 0x340   :  { %v1051_v23 = vrot.slane %v1050_v21, 1  ;;  %v1039_v25 = vadd.f32 %v1038_v22, %v1037_v20 }
 0x342   :  { %v1052_v24 = vadd.f32 %v1051_v23, %v1050_v21 }
 0x344   :  { %1181 = vmatprep.mubr.f32.mxu0 %v1052_v24 }
 0x345   :  { %1182 = vmatmul.mubr.f32.vlgmr.msra.gmra.mxu0 %v1039_v25 }
 0x346   :  { %1651 = shalt.err (!%p1648_p1)
}
 0x347   :  { %1254 = dma.vmem_to_hbm [thread:$0]  %s1249_s12, 512, %s2198_s8, [#allocation4], %s1697_s25, %s1697_s25, %s1698_s26   ;;  %v1536_v56 = vld [vmem:[#allocation2] sm:$0xff]  ;;  %v1537_v10 = vld [vmem:[#allocation2 + $0x8] sm:$0xff]  ;;  %v1538_v59 = vld [vmem:[#allocation2 + $0x10] sm:$0xff] }
 0x348   :  { %v1352_v41 = vld [vmem:[%s2196_s6] ss:$0 sm:$0xff]  ;;  %s1703_s24 = smov [#allocation12]   ;;  %v1539_v61 = vld [vmem:[#allocation2 + $0x18] sm:$0xff] }
 0x349   :  { %v1353_v49 = vld [vmem:[%s2197_s7] ss:$0 sm:$0xff]  ;;  %s1260_s1 = sshll.u32 %s1703_s24, 4  ;;  %s1261_s1 = int_to_ptr.vmem [resolvable:$true] %s1260_s1 }
 0x34a   :  { %s1660_s6 = scalar_lea.vmem %s1261_s1, 512  ;;  %p1665_p3 = scmp.lt.s32.totalorder %s1261_s1, %s1261_s1 }
 0x34b   :  { %p1661_p2 = scmp.ne.s32.totalorder %s1261_s1, %s1660_s6  ;;  %p1666_p4 = scmp.lt.s32.totalorder %s1660_s6, %s1660_s6 }
 0x34d   :  { %p1667_p5 = por %p1666_p4, %p1665_p3 }
 0x34f   :  { %p1668_p6 = pnand %p1667_p5, %p1661_p2 }
 0x405   :  { %v1183_v26 = vpop.f32.mrf.mxu0 }
 0x406   :  { %v1188_v27 = vmul.f32 %v1183_v26, %v1183_v26  ;;  %v1194_v32 = vrot.slane %v1183_v26, %v2135_v48 }
 0x407   :  { %v1185_v28 = vpop.f32.mrf.mxu0 }
 0x408   :  { %v1189_v29 = vsub.f32 %v1185_v28, %v1188_v27  ;;  %v1195_v35 = vsub.f32 %v1017_v0, %v1194_v32  ;;  %v1196_v36 = vsub.f32 %v1020_v43, %v1194_v32  ;;  %v1197_v38 = vsub.f32 %v1025_v51, %v1194_v32 }
 0x409   :  { %v1198_v39 = vsub.f32 %v1028_v5, %v1194_v32 }
 0x40a   :  { %v1190_v30 = vmax.f32 %v1189_v29, 0.0 }
 0x40c   :  { %v1199_v31 = vadd.f32 1e-05, %v1190_v30 }
 0x40e   :  { %1534 = vrsqrt.f32 %v1199_v31 }
 0x41b   :  { %v1535_v33 = vpop.eup %1534 }
 0x41c   :  { %v1204_v40 = vrot.slane %v1535_v33, %v2135_v48 }
 0x41e   :  { %v1205_v42 = vmul.f32 %v1204_v40, %v1195_v35  ;;  %v1206_v44 = vmul.f32 %v1204_v40, %v1196_v36  ;;  %v1207_v45 = vmul.f32 %v1204_v40, %v1197_v38  ;;  %v1208_v46 = vmul.f32 %v1204_v40, %v1198_v39 }
 0x420   :  { %v1216_v50 = vmul.f32 %v1352_v41, %v1205_v42  ;;  %v1217_v53 = vmul.f32 %v1352_v41, %v1206_v44  ;;  %v1218_v55 = vmul.f32 %v1352_v41, %v1207_v45  ;;  %v1219_v37 = vmul.f32 %v1352_v41, %v1208_v46 }
 0x422   :  { %v1227_v3 = vadd.f32 %v1353_v49, %v1216_v50  ;;  %v1228_v47 = vadd.f32 %v1353_v49, %v1217_v53  ;;  %v1229_v34 = vadd.f32 %v1353_v49, %v1218_v55  ;;  %v1230_v48 = vadd.f32 %v1353_v49, %v1219_v37 }
 0x424   :  { %v1231_v58 = vadd.f32 %v1536_v56, %v1227_v3  ;;  %v1232_v57 = vadd.f32 %v1537_v10, %v1228_v47  ;;  %v1233_v60 = vadd.f32 %v1538_v59, %v1229_v34  ;;  %v1234_v62 = vadd.f32 %v1539_v61, %v1230_v48 }
 0x426   :  { %v1235_v63 = vmax.f32 %v1231_v58, 0.0  ;;  %v1236_v0 = vmax.f32 %v1232_v57, 0.0  ;;  %v1237_v1 = vmax.f32 %v1233_v60, 0.0  ;;  %v1238_v2 = vmax.f32 %v1234_v62, 0.0 }
 0x428   :  { %1239 = vst [vmem:[#allocation12] sm:$0xff] %v1235_v63  ;;  %1240 = vst [vmem:[#allocation12 + $0x8] sm:$0xff] %v1236_v0 }
 0x429   :  { %1241 = vst [vmem:[#allocation12 + $0x10] sm:$0xff] %v1237_v1  ;;  %1242 = vst [vmem:[#allocation12 + $0x18] sm:$0xff] %v1238_v2 }
 0x42a   :  { %1671 = shalt.err (!%p1668_p6)
}
 0x42b   :  { %1266 = dma.vmem_to_hbm [thread:$0]  %s1261_s1, 512, %s2199_s9, [#allocation13], %s1697_s25, %s1697_s25, %s1698_s26  }
 0x42c   :  { %1686 = dma.done.wait [#allocation4], 512  }
 0x42d   :  { %1687 = vsyncadd [#allocation4], 4294966784 }
 0x42e   :  { %1688 = dma.done.wait [#allocation13], 512  }
 0x42f   :  { %1689 = vsyncadd [#allocation13], 4294966784 }
 0x430   :  { %1273 = vsyncpa [#allocation3], 1 }
 0x431   :  { %1274 = vsyncpa [#allocation6], 1 }
 0x432   :  { %1275 = vsyncpa [#allocation9], 1 }
 0x433   :  { %1276 = vsyncpa [#allocation4], 1 }
 0x434   :  { %1277 = vsyncpa [#allocation13], 1 }

</bundles_post_ra>
